<compile_context>
chip_gen: v7x
topology: tpu7x:2x2x1
jax: 0.10.0
libtpu: 0.0.40
codegen_flags: <defaults>
</compile_context>

<pallas_src>
import functools
import math

import jax
import jax.numpy as jnp
from jax import lax
from jax.experimental import pallas as pl
from jax.experimental.pallas import tpu as pltpu

_INV_SQRT2 = 1.0 / math.sqrt(2.0)
_LN_EPS = 1e-5

_VMEM_TILE_BUDGET = 24 * 1024 * 1024   # target footprint used for TM sizing
_VMEM_LIMIT_BYTES = 48 * 1024 * 1024   # explicit scoped-VMEM limit (fits v5e/v6e/v7x)


def _transform_kernel(x_ref, wd_ref, bd_ref, gamma_ref, beta_ref, out_ref):
    # Dense on the MXU: bf16 x bf16 -> f32 accumulation.  [TM, H] @ [H, O]
    h = jnp.dot(x_ref[...], wd_ref[...], preferred_element_type=jnp.float32)
    h = h + bd_ref[...]                                   # [TM, O] + [1, O]
    # Exact (erf-based) GELU — matches PyTorch ACT2FN['gelu'].
    h = h * 0.5 * (1.0 + lax.erf(h * _INV_SQRT2))
    # LayerNorm over the full feature dim (block carries all of O), eps=1e-5.
    # Single pass: var = E[h^2] - E[h]^2 (both reductions go to the XLU slot).
    mean = jnp.mean(h, axis=-1, keepdims=True)
    mean_sq = jnp.mean(h * h, axis=-1, keepdims=True)
    var = jnp.maximum(mean_sq - mean * mean, 0.0)
    inv = lax.rsqrt(var + _LN_EPS)
    out_ref[...] = ((h - mean) * inv * gamma_ref[...] + beta_ref[...]).astype(out_ref.dtype)


def _choose_row_tile(n_rows: int, h: int, o: int,
                     budget: int = _VMEM_TILE_BUDGET) -> int:
    """Largest row tile whose estimated VMEM footprint fits the budget."""
    # Resident operands, conservatively counted as double-buffered:
    #   weight (bf16) + bias/gamma/beta (f32).
    resident = 2 * (h * o * 2) + 2 * (3 * o * 4)
    tm = 8
    for cand in (1024, 768, 512, 384, 256, 128, 64, 32, 16, 8):
        streamed = 2 * cand * h * 2      # x tile, bf16, double-buffered
        streamed += 2 * cand * o * 4     # out tile, f32, double-buffered
        scratch = 3 * cand * o * 4       # f32 matmul acc + GELU/LN temps (estimate)
        if resident + streamed + scratch <= budget:
            tm = cand
            break
    # Never tile wider than the row count (rows get padded up to TM).
    if n_rows < tm:
        tm = max(8, ((n_rows + 7) // 8) * 8)
    # Prefer >= 2 grid steps so the "parallel" axis feeds both v7x TensorCores.
    while tm > 128 and pl.cdiv(n_rows, tm) < 2:
        tm //= 2
    return tm


def bert_prediction_head_transform(hidden_states, params):
    """hidden_states: [B, S, H] float32 -> [B, S, O] float32."""
    B, S, H = hidden_states.shape

    w = params["w_dense"].astype(jnp.bfloat16)                 # [H, O], MXU-native
    O = w.shape[1]
    b = params["b_dense"].astype(jnp.float32).reshape(1, O)
    gamma = params["ln_gamma"].astype(jnp.float32).reshape(1, O)
    beta = params["ln_beta"].astype(jnp.float32).reshape(1, O)

    N = B * S
    # Cast x once outside the kernel: halves the streamed-tile DMA bytes.
    x2d = hidden_states.reshape(N, H).astype(jnp.bfloat16)

    TM = _choose_row_tile(N, H, O)
    grid_m = pl.cdiv(N, TM)
    n_pad = grid_m * TM
    if n_pad != N:
        x2d = jnp.pad(x2d, ((0, n_pad - N), (0, 0)))

    out2d = pl.pallas_call(
        _transform_kernel,
        out_shape=jax.ShapeDtypeStruct((n_pad, O), jnp.float32),
        grid_spec=pltpu.PrefetchScalarGridSpec(
            num_scalar_prefetch=0,
            grid=(grid_m,),
            in_specs=[
                pl.BlockSpec((TM, H), lambda i: (i, 0)),   # x tile (streamed, bf16)
                pl.BlockSpec((H, O), lambda i: (0, 0)),    # Wd (resident, bf16)
                pl.BlockSpec((1, O), lambda i: (0, 0)),    # bd (resident)
                pl.BlockSpec((1, O), lambda i: (0, 0)),    # gamma (resident)
                pl.BlockSpec((1, O), lambda i: (0, 0)),    # beta (resident)
            ],
            out_specs=pl.BlockSpec((TM, O), lambda i: (i, 0)),
        ),
        compiler_params=pltpu.CompilerParams(
            dimension_semantics=("parallel",),
            vmem_limit_bytes=_VMEM_LIMIT_BYTES,
        ),
    )(x2d, w, b, gamma, beta)

    return out2d[:N].reshape(B, S, O)


# Pure-JAX (f32) reference for correctness checking.
def _reference(hidden_states, params):
    w = params["w_dense"].astype(jnp.float32)
    h = hidden_states @ w + params["b_dense"].astype(jnp.float32).reshape(-1)
    h = h * 0.5 * (1.0 + lax.erf(h * _INV_SQRT2))
    mean = jnp.mean(h, axis=-1, keepdims=True)
    var = jnp.mean((h - mean) ** 2, axis=-1, keepdims=True)
    h = (h - mean) * lax.rsqrt(var + _LN_EPS)
    return h * params["ln_gamma"].reshape(-1) + params["ln_beta"].reshape(-1)


def make_params(key, hidden_size, relax_projection=1):
    out_size = hidden_size * max(1, relax_projection)
    k0, k1 = jax.random.split(key, 2)
    scale = 0.02
    # Stored as [in, out] (transpose of PyTorch's [out, in]); weight kept bf16.
    w_dense = (scale * jax.random.normal(k0, (hidden_size, out_size), jnp.float32)
               ).astype(jnp.bfloat16)
    b_dense = scale * jax.random.normal(k1, (1, out_size), jnp.float32)
    ln_gamma = jnp.ones((1, out_size), jnp.float32)
    ln_beta = jnp.zeros((1, out_size), jnp.float32)
    return {
        "w_dense": w_dense, "b_dense": b_dense,
        "ln_gamma": ln_gamma, "ln_beta": ln_beta,
    }


if __name__ == "__main__":
    key = jax.random.PRNGKey(0)
    k_x, k_p, k_x2 = jax.random.split(key, 3)

    B, S, H = 2, 8, 32
    params = make_params(k_p, H)
    hidden_states = jax.random.normal(k_x, (B, S, H), jnp.float32)

    fn = jax.jit(functools.partial(bert_prediction_head_transform, params=params))
    out = jax.block_until_ready(fn(hidden_states))
    assert out.shape == (B, S, H)
    ref = _reference(hidden_states, params)
    # bf16 MXU operands -> loose-but-tight-enough tolerance vs the f32 reference.
    assert jnp.allclose(out, ref, atol=2e-2, rtol=2e-2), "mismatch vs reference"

    # Exercise the cdiv/padded-tail path (N = 14 rows, not a multiple of 8).
    x_odd = jax.random.normal(k_x2, (2, 7, H), jnp.float32)
    out_odd = jax.block_until_ready(
        jax.jit(functools.partial(bert_prediction_head_transform, params=params))(x_odd))
    assert out_odd.shape == (2, 7, H)
    assert jnp.allclose(out_odd, _reference(x_odd, params), atol=2e-2, rtol=2e-2)

    # TODO(synk): relax_projection>1 is supported via a wider dense output
    # (O = H * relax_projection); downstream task_idx slicing lives outside
    # this module's forward and is not implemented here.
    print("KERNEL_OK")
</pallas_src>

<mosaic_0001>
module attributes {stable_mosaic.version = 11 : i64} {
  func.func @_transform_kernel(%arg0: i32, %arg1: memref<16x32xbf16, #tpu.memory_space<vmem>>, %arg2: memref<32x32xbf16, #tpu.memory_space<vmem>>, %arg3: memref<1x32xf32, #tpu.memory_space<vmem>>, %arg4: memref<1x32xf32, #tpu.memory_space<vmem>>, %arg5: memref<1x32xf32, #tpu.memory_space<vmem>>, %arg6: memref<16x32xf32, #tpu.memory_space<vmem>>) attributes {dimension_semantics = [#tpu.dimension_semantics<parallel>], iteration_bounds = array<i64: 1>, scalar_prefetch = 0 : i64, scratch_operands = 0 : i64, tpu.core_type = #tpu.core_type<tc>, window_params = [{transform_indices = @transform_0, window_bounds = array<i64: 16, 32>}, {pipeline_mode = #tpu.pipeline_mode<synchronous>, transform_indices = @transform_1, window_bounds = array<i64: 32, 32>}, {pipeline_mode = #tpu.pipeline_mode<synchronous>, transform_indices = @transform_2, window_bounds = array<i64: 1, 32>}, {pipeline_mode = #tpu.pipeline_mode<synchronous>, transform_indices = @transform_3, window_bounds = array<i64: 1, 32>}, {pipeline_mode = #tpu.pipeline_mode<synchronous>, transform_indices = @transform_4, window_bounds = array<i64: 1, 32>}, {transform_indices = @transform_5, window_bounds = array<i64: 16, 32>}]} {
    %c0 = arith.constant 0 : index
    %c0_0 = arith.constant 0 : index
    %0 = vector.load %arg1[%c0, %c0_0] : memref<16x32xbf16, #tpu.memory_space<vmem>>, vector<16x32xbf16>
    %c0_1 = arith.constant 0 : index
    %c0_2 = arith.constant 0 : index
    %1 = vector.load %arg2[%c0_1, %c0_2] : memref<32x32xbf16, #tpu.memory_space<vmem>>, vector<32x32xbf16>
    %cst = arith.constant dense<0.000000e+00> : vector<16x32xf32>
    %2 = tpu.matmul %0, %1, %cst {dimension_numbers = #tpu.dot_dimension_numbers<[1], [0], [0], [1], [0, 0, 1, 1], [], []>} : vector<16x32xbf16>, vector<32x32xbf16>, vector<16x32xf32> -> vector<16x32xf32>
    %c0_3 = arith.constant 0 : index
    %c0_4 = arith.constant 0 : index
    %3 = vector.load %arg3[%c0_3, %c0_4] : memref<1x32xf32, #tpu.memory_space<vmem>>, vector<1x32xf32>
    %4 = vector.broadcast %3 : vector<1x32xf32> to vector<16x32xf32>
    %5 = arith.addf %2, %4 : vector<16x32xf32>
    %cst_5 = arith.constant 5.000000e-01 : f32
    %6 = vector.broadcast %cst_5 : f32 to vector<16x32xf32>
    %7 = arith.mulf %5, %6 : vector<16x32xf32>
    %cst_6 = arith.constant 0.707106769 : f32
    %8 = vector.broadcast %cst_6 : f32 to vector<16x32xf32>
    %9 = arith.mulf %5, %8 : vector<16x32xf32>
    %10 = math.erf %9 : vector<16x32xf32>
    %cst_7 = arith.constant 1.000000e+00 : f32
    %11 = vector.broadcast %cst_7 : f32 to vector<16x32xf32>
    %12 = arith.addf %11, %10 : vector<16x32xf32>
    %13 = arith.mulf %7, %12 : vector<16x32xf32>
    %cst_8 = arith.constant dense<0.000000e+00> : vector<16xf32>
    %14 = vector.multi_reduction <add>, %13, %cst_8 [1] : vector<16x32xf32> to vector<16xf32>
    %15 = vector.shape_cast %14 : vector<16xf32> to vector<16x1xf32>
    %cst_9 = arith.constant 3.200000e+01 : f32
    %16 = vector.broadcast %cst_9 : f32 to vector<16x1xf32>
    %17 = arith.divf %15, %16 : vector<16x1xf32>
    %18 = arith.mulf %13, %13 : vector<16x32xf32>
    %cst_10 = arith.constant dense<0.000000e+00> : vector<16xf32>
    %19 = vector.multi_reduction <add>, %18, %cst_10 [1] : vector<16x32xf32> to vector<16xf32>
    %20 = vector.shape_cast %19 : vector<16xf32> to vector<16x1xf32>
    %cst_11 = arith.constant 3.200000e+01 : f32
    %21 = vector.broadcast %cst_11 : f32 to vector<16x1xf32>
    %22 = arith.divf %20, %21 : vector<16x1xf32>
    %23 = arith.mulf %17, %17 : vector<16x1xf32>
    %24 = arith.subf %22, %23 : vector<16x1xf32>
    %cst_12 = arith.constant 0.000000e+00 : f32
    %25 = vector.broadcast %cst_12 : f32 to vector<16x1xf32>
    %26 = arith.maximumf %24, %25 : vector<16x1xf32>
    %cst_13 = arith.constant 9.99999974E-6 : f32
    %27 = vector.broadcast %cst_13 : f32 to vector<16x1xf32>
    %28 = arith.addf %26, %27 : vector<16x1xf32>
    %29 = math.rsqrt %28 : vector<16x1xf32>
    %30 = vector.broadcast %17 : vector<16x1xf32> to vector<16x32xf32>
    %31 = arith.subf %13, %30 : vector<16x32xf32>
    %32 = vector.broadcast %29 : vector<16x1xf32> to vector<16x32xf32>
    %33 = arith.mulf %31, %32 : vector<16x32xf32>
    %c0_14 = arith.constant 0 : index
    %c0_15 = arith.constant 0 : index
    %34 = vector.load %arg4[%c0_14, %c0_15] : memref<1x32xf32, #tpu.memory_space<vmem>>, vector<1x32xf32>
    %35 = vector.broadcast %34 : vector<1x32xf32> to vector<16x32xf32>
    %36 = arith.mulf %33, %35 : vector<16x32xf32>
    %c0_16 = arith.constant 0 : index
    %c0_17 = arith.constant 0 : index
    %37 = vector.load %arg5[%c0_16, %c0_17] : memref<1x32xf32, #tpu.memory_space<vmem>>, vector<1x32xf32>
    %38 = vector.broadcast %37 : vector<1x32xf32> to vector<16x32xf32>
    %39 = arith.addf %36, %38 : vector<16x32xf32>
    %c0_18 = arith.constant 0 : index
    %c0_19 = arith.constant 0 : index
    %40 = vector.load %arg6[%c0_18, %c0_19] : memref<16x32xf32, #tpu.memory_space<vmem>>, vector<16x32xf32>
    tpu.vector_store %arg6[%c0_18, %c0_19], %39 {strides = array<i32>} : memref<16x32xf32, #tpu.memory_space<vmem>>, vector<16x32xf32>,
    return
  }
  func.func @transform_0(%arg0: i32) -> (i32, i32) {
    %c0_i32 = arith.constant 0 : i32
    %c0_i32_0 = arith.constant 0 : i32
    return %arg0, %c0_i32 : i32, i32
  }
  func.func @transform_1(%arg0: i32) -> (i32, i32) {
    %c0_i32 = arith.constant 0 : i32
    %c0_i32_0 = arith.constant 0 : i32
    %c0_i32_1 = arith.constant 0 : i32
    return %c0_i32, %c0_i32_0 : i32, i32
  }
  func.func @transform_2(%arg0: i32) -> (i32, i32) {
    %c0_i32 = arith.constant 0 : i32
    %c0_i32_0 = arith.constant 0 : i32
    %c0_i32_1 = arith.constant 0 : i32
    return %c0_i32, %c0_i32_0 : i32, i32
  }
  func.func @transform_3(%arg0: i32) -> (i32, i32) {
    %c0_i32 = arith.constant 0 : i32
    %c0_i32_0 = arith.constant 0 : i32
    %c0_i32_1 = arith.constant 0 : i32
    return %c0_i32, %c0_i32_0 : i32, i32
  }
  func.func @transform_4(%arg0: i32) -> (i32, i32) {
    %c0_i32 = arith.constant 0 : i32
    %c0_i32_0 = arith.constant 0 : i32
    %c0_i32_1 = arith.constant 0 : i32
    return %c0_i32, %c0_i32_0 : i32, i32
  }
  func.func @transform_5(%arg0: i32) -> (i32, i32) {
    %c0_i32 = arith.constant 0 : i32
    %c0_i32_0 = arith.constant 0 : i32
    return %arg0, %c0_i32 : i32, i32
  }
}

</mosaic_0001>

<bundles_post_ra>
// kernel: bert_prediction_head_transform.1
= control target key start
LH: loop header
LB: loop body
LE: loop exit
PB: predicated region body
PF: predicated region fallthrough
CT: control target
= control target key end

     0   :  { %v234_v1 = vmov 0.0   ;;  %vm235_vm0 = vmmov 0   ;;  %s306_s0 = inlined_call_operand.vmem [shape: bf16[16,32], index: 0, kind: input, shape index: {}]   ;;  %s307_s1 = inlined_call_operand.vmem [shape: bf16[32,32], index: 1, kind: input, shape index: {}]   ;;  %s308_s2 = inlined_call_operand.vmem [shape: f32[1,32], index: 2, kind: input, shape index: {}]   ;;  %s309_s3 = inlined_call_operand.vmem [shape: f32[1,32], index: 3, kind: input, shape index: {}]   ;;  %s310_s4 = inlined_call_operand.vmem [shape: f32[1,32], index: 4, kind: input, shape index: {}]   ;;  %s311_s5 = inlined_call_operand.hbm [shape: f32[16,32], index: 5, kind: output, shape index: {}]  }
   0x1   :  { %v199_v0 = vld [vmem:[%s307_s1] sm:$0xff]   ;;  %186 = vmatprep.subr.bf16.mxu0 %v234_v1  ;;  %v200_v2 = vld [vmem:[%s307_s1 + $0x8] sm:$0xff]   ;;  %190 = vmatprep.mubr.msk.bf16.mxu0 %vm235_vm0, %v234_v1 }
   0x2   :  { %187 = vmatpush3.bf16.msra.mxu0 %v199_v0 }
   0x3   :  { %188 = vmatprep.subr.bf16.mxu0 %v234_v1 }
   0x4   :  { %10 = vsyncpa [#allocation3], 0  ;;  %v201_v3 = vld [vmem:[%s306_s0] sm:$0xff]   ;;  %vm52_vm1 = vcmask 261120   ;;  %s236_s27 = smov [#allocation2]  }
   0x5   :  { %v176_v4 = vld [vmem:[%s308_s2] ss:$0 sm:$0xff]  ;;  %s165_s28 = sshll.u32 %s236_s27, 4  ;;  %s166_s28 = int_to_ptr.vmem [resolvable:$true] %s165_s28 }
   0x6   :  { %189 = vmatpush3.bf16.msra.mxu0 %v200_v2  ;;  %v181_v45 = vld [vmem:[%s309_s3] ss:$0 sm:$0xff]  ;;  %s210_s3 = scalar_lea.vmem %s166_s28, 256  ;;  %p215_p1 = scmp.lt.s32.totalorder %s166_s28, %s166_s28 }
   0x7   :  { %v182_v47 = vld [vmem:[%s310_s4] ss:$0 sm:$0xff]  ;;  %p211_p0 = scmp.ne.s32.totalorder %s166_s28, %s210_s3  ;;  %p216_p2 = scmp.lt.s32.totalorder %s210_s3, %s210_s3 }
   0x9   :  { %191 = vmatmul.mubr.msk.bf16.vlgmr.msra.gmra.mrb[0].mxu0 %vm52_vm1, %v201_v3  ;;  %p217_p3 = por %p216_p2, %p215_p1 }
   0xb   :  { %p218_p4 = pnand %p217_p3, %p211_p0 }
  0xdc   :  { %v90_v5 = vpop.f32.mrb[0].mxu0 }
  0xdd   :  { %v91_v6 = vadd.f32 %v176_v4, %v90_v5  ;;  %v192_v7 = vpop.f32.mrb[1].mxu0 }
  0xde   :  { %v93_v8 = vpop.f32.mrb[2].mxu0 }
  0xdf   :  { %v99_v9 = vmul.f32 0.70710677, %v91_v6  ;;  %v94_v10 = vadd.f32 %v176_v4, %v93_v8  ;;  %v193_v11 = vpop.f32.mrb[3].mxu0  ;;  %v97_v14 = vmul.f32 0.5, %v91_v6 }
  0xe1   :  { %202 = verf.f32 %v99_v9  ;;  %v100_v12 = vmul.f32 0.70710677, %v94_v10  ;;  %v98_v17 = vmul.f32 0.5, %v94_v10 }
  0xe3   :  { %204 = verf.f32 %v100_v12 }
  0xeb   :  { %v203_v13 = vpop.eup %202 }
  0xec   :  { %v103_v15 = vadd.f32 1.0, %v203_v13 }
  0xed   :  { %v205_v16 = vpop.eup %204 }
  0xee   :  { %v104_v18 = vadd.f32 1.0, %v205_v16  ;;  %v105_v19 = vmul.f32 %v103_v15, %v97_v14 }
  0xf0   :  { %v106_v20 = vmul.f32 %v104_v18, %v98_v17  ;;  %v107_v21 = vsel %vm52_vm1, %v105_v19, 0.0  ;;  %v116_v22 = vmul.f32 %v105_v19, %v105_v19 }
  0xf1   :  { %108 = vadd.xlane.f32.xlu0 %v107_v21 }
  0xf2   :  { %v118_v23 = vsel %vm52_vm1, %v116_v22, 0.0  ;;  %v117_v24 = vmul.f32 %v106_v20, %v106_v20  ;;  %v110_v25 = vsel %vm52_vm1, %v106_v20, 0.0 }
  0xf3   :  { %119 = vadd.xlane.f32.xlu1 %v118_v23 }
  0xf4   :  { %v121_v26 = vsel %vm52_vm1, %v117_v24, 0.0 }
  0xf5   :  { %111 = vadd.xlane.f32.xlu0 %v110_v25 }
  0xf7   :  { %122 = vadd.xlane.f32.xlu1 %v121_v26 }
 0x17e   :  { %v109_v27 = vpop.xlane.xlu0 %108 }
 0x17f   :  { %v114_v28 = vmul.f32 0.03125, %v109_v27 }
 0x180   :  { %v120_v29 = vpop.xlane.xlu1 %119 }
 0x181   :  { %v126_v30 = vmul.f32 %v114_v28, %v114_v28  ;;  %v124_v31 = vmul.f32 0.03125, %v120_v29  ;;  %v136_v43 = vsub.f32 %v105_v19, %v114_v28 }
 0x182   :  { %v112_v32 = vpop.xlane.xlu0 %111 }
 0x183   :  { %v128_v33 = vsub.f32 %v124_v31, %v126_v30  ;;  %v115_v34 = vmul.f32 0.03125, %v112_v32 }
 0x184   :  { %v123_v35 = vpop.xlane.xlu1 %122 }
 0x185   :  { %v130_v36 = vmax.f32 %v128_v33, 0.0  ;;  %v127_v37 = vmul.f32 %v115_v34, %v115_v34  ;;  %v125_v38 = vmul.f32 0.03125, %v123_v35  ;;  %v137_v48 = vsub.f32 %v106_v20, %v115_v34 }
 0x187   :  { %v132_v39 = vadd.f32 1e-05, %v130_v36  ;;  %v129_v40 = vsub.f32 %v125_v38, %v127_v37 }
 0x189   :  { %206 = vrsqrt.f32 %v132_v39  ;;  %v131_v41 = vmax.f32 %v129_v40, 0.0 }
 0x18b   :  { %v133_v42 = vadd.f32 1e-05, %v131_v41 }
 0x18d   :  { %208 = vrsqrt.f32 %v133_v42 }
 0x193   :  { %v207_v44 = vpop.eup %206 }
 0x194   :  { %v138_v46 = vmul.f32 %v207_v44, %v136_v43 }
 0x196   :  { %v147_v49 = vmul.f32 %v181_v45, %v138_v46 }
 0x197   :  { %v209_v50 = vpop.eup %208 }
 0x198   :  { %v139_v51 = vmul.f32 %v209_v50, %v137_v48  ;;  %v156_v52 = vadd.f32 %v182_v47, %v147_v49 }
 0x19a   :  { %v148_v53 = vmul.f32 %v181_v45, %v139_v51  ;;  %158 = vst.msk [vmem:[#allocation2] sm:$0xff] %vm52_vm1, %v156_v52 }
 0x19c   :  { %v157_v54 = vadd.f32 %v182_v47, %v148_v53 }
 0x19e   :  { %159 = vst.msk [vmem:[#allocation2 + $0x8] sm:$0xff] %vm52_vm1, %v157_v54 }
 0x19f   :  { %221 = shalt.err (!%p218_p4)
}
 0x1a0   :  { %s222_s30 = scalar_lea.hbm %s311_s5, 256 }
 0x1a1   :  { %p223_p5 = scmp.ne.s32.totalorder %s311_s5, %s222_s30  ;;  %p226_p6 = scmp.lt.u32.totalorder %s222_s30, %s311_s5 }
 0x1a3   :  { %p228_p7 = pnand %p226_p6, %p223_p5 }
 0x1a5   :  { %231 = shalt.err (!%p228_p7)
}
 0x1a6   :  { %s237_s10 = smov 128   ;;  %s238_s11 = smov 8  }
 0x1a7   :  { %171 = dma.vmem_to_hbm [thread:$0]  %s166_s28, 256, %s311_s5, [#allocation3], %s237_s10, %s237_s10, %s238_s11  }
 0x1a8   :  { %232 = dma.done.wait [#allocation3], 256  }
 0x1a9   :  { %233 = vsyncadd [#allocation3], 4294967040 }
 0x1aa   :  { %175 = vsyncpa [#allocation3], 1 }

</bundles_post_ra>
